<compile_context>
chip_gen: v7x
topology: tpu7x:2x2x1
jax: 0.10.0
libtpu: 0.0.40
codegen_flags: <defaults>
</compile_context>

<pallas_src>
import functools

import numpy as np
import jax
import jax.numpy as jnp
from jax.experimental import pallas as pl
from jax.experimental.pallas import tpu as pltpu


_LANE = 128
_SUBLANE = 8
_TARGET_BLOCK_ELEMS = 256 * 1024   # ~1 MiB per f32 buffer per tile


def _prod(xs):
    out = 1
    for v in xs:
        out *= int(v)
    return out


def _pick_lane_cols(n):
    """Largest multiple-of-128 divisor of n from a friendly list, else n."""
    for c in (2048, 1024, 512, 384, 256, 128):
        if n % c == 0:
            return c
    return n  # not lane-alignable; keep a single (possibly ragged) column axis


def _pick_tiles(rows, cols):
    """Choose (tile_r, tile_c) obeying the (8, 128) block constraints."""
    if cols % _LANE == 0:
        tile_c = min(cols, 2048)                 # multiple of 128 -> legal
    else:
        tile_c = cols if cols <= 4096 else 4096  # full extent or mult of 128
    tile_r = max(1, _TARGET_BLOCK_ELEMS // tile_c)
    if tile_r >= rows:
        tile_r = rows                            # full extent: always legal
    else:
        tile_r = max(_SUBLANE, (tile_r // _SUBLANE) * _SUBLANE)
    return tile_r, tile_c


def _dropout_train_kernel(bits_ref, x_ref, o_ref, *, threshold):
    # keep  <=>  uniform > p  <=>  bits >= round(p * 2**32)
    keep = bits_ref[...] >= threshold                        # (tr, tc) bool
    o_ref[...] = jnp.where(keep[None], x_ref[...], jnp.zeros((), x_ref.dtype))


def _dropout_eval_kernel(x_ref, o_ref, *, scale):
    o_ref[...] = x_ref[...] * jnp.asarray(scale, dtype=x_ref.dtype)


def _eval_path(x, p):
    scale = 1.0 - p
    total = x.size
    cols = _pick_lane_cols(total)
    rows = total // cols
    tile_r, tile_c = _pick_tiles(rows, cols)
    x2 = x.reshape(rows, cols)
    kern = functools.partial(_dropout_eval_kernel, scale=scale)
    out2 = pl.pallas_call(
        kern,
        out_shape=jax.ShapeDtypeStruct((rows, cols), x.dtype),
        grid=(pl.cdiv(rows, tile_r), pl.cdiv(cols, tile_c)),
        in_specs=[pl.BlockSpec((tile_r, tile_c), lambda r, c: (r, c))],
        out_specs=pl.BlockSpec((tile_r, tile_c), lambda r, c: (r, c)),
        compiler_params=pltpu.CompilerParams(
            dimension_semantics=("parallel", "parallel"),
            vmem_limit_bytes=32 * 1024 * 1024,
        ),
    )(x2)
    return out2.reshape(x.shape)


def pallas_dropout(x, *, dropout, broadcast_dims=(), training=True, key=None):
    """Pallas equivalent of Dropout.forward.

    Args:
      x: input array (e.g. (B, T, H)).
      dropout: dropout rate p.
      broadcast_dims: dims along which the dropout mask is shared.
      training: training vs eval behavior (static).
      key: jax PRNG key for the mask (stands in for torch.rand RNG state).
    """
    p = float(dropout)

    if not training:
        return _eval_path(x, p)

    if p >= 1.0:          # keep-probability 0
        return jnp.zeros_like(x)
    if key is None:
        key = jax.random.PRNGKey(0)

    ndim = x.ndim
    bdims = tuple(sorted(d % ndim for d in broadcast_dims))
    odims = tuple(d for d in range(ndim) if d not in bdims)
    perm = bdims + odims
    needs_perm = perm != tuple(range(ndim))

    # For the typical case (broadcast dims are a leading prefix, e.g. batch)
    # this transpose is the identity and the reshapes below are free views.
    xp = jnp.transpose(x, perm) if needs_perm else x
    bshape = tuple(int(x.shape[d]) for d in bdims)
    oshape = tuple(int(x.shape[d]) for d in odims)
    r_b = max(1, _prod(bshape))
    r_m = max(1, _prod(oshape))

    cols = _pick_lane_cols(r_m)
    rows = r_m // cols
    tile_r, tile_c = _pick_tiles(rows, cols)

    x3 = xp.reshape(r_b, rows, cols)
    # Random bits shared along the broadcast axis: only (rows, cols) of them.
    bits = jax.random.bits(key, (rows, cols), dtype=jnp.uint32)

    # keep iff bits >= round(p * 2**32)  (keep probability ~ 1 - p; matches
    # torch.rand(mask) > p up to <= 2**-32 quantization).
    threshold = np.uint32(min(int(round(p * (1 << 32))), (1 << 32) - 1))
    kern = functools.partial(_dropout_train_kernel, threshold=threshold)

    grid = (pl.cdiv(rows, tile_r), pl.cdiv(cols, tile_c), r_b)

    out3 = pl.pallas_call(
        kern,
        out_shape=jax.ShapeDtypeStruct((r_b, rows, cols), x.dtype),
        grid=grid,
        in_specs=[
            # mask bits: independent of the broadcast axis b -> block stays
            # resident (no re-DMA) while b sweeps on the innermost grid axis.
            pl.BlockSpec((tile_r, tile_c), lambda r, c, b: (r, c)),
            pl.BlockSpec((1, tile_r, tile_c), lambda r, c, b: (b, r, c)),
        ],
        out_specs=pl.BlockSpec((1, tile_r, tile_c), lambda r, c, b: (b, r, c)),
        compiler_params=pltpu.CompilerParams(
            dimension_semantics=("parallel", "parallel", "parallel"),
            vmem_limit_bytes=32 * 1024 * 1024,
        ),
    )(bits, x3)

    out = out3.reshape(bshape + oshape)
    if needs_perm:
        inv = tuple(int(i) for i in np.argsort(perm))
        out = jnp.transpose(out, inv)
    return out.reshape(x.shape)


if __name__ == "__main__":
    key = jax.random.PRNGKey(0)
    kx, kmask = jax.random.split(key)

    B, T, H = 2, 8, 32
    x = jax.random.normal(kx, (B, T, H), dtype=jnp.float32)

    dropout = 0.25
    broadcast_dims = (0,)  # share the dropout mask across the batch dim

    # Training mode: random mask, broadcast (shared) over dim 0.
    y_train = pallas_dropout(
        x, dropout=dropout, broadcast_dims=broadcast_dims, training=True,
        key=kmask)
    y_train = jax.block_until_ready(y_train)
    assert y_train.shape == x.shape

    # Mask shared across the broadcast (batch) dim -> identical zero pattern.
    dropped0 = np.asarray(y_train[0] == 0.0)
    dropped1 = np.asarray(y_train[1] == 0.0)
    assert np.array_equal(dropped0, dropped1)

    # Kept entries are exactly x (the module does NOT rescale by 1/(1-p)).
    kept = ~dropped0
    assert np.allclose(np.asarray(y_train[0])[kept], np.asarray(x[0])[kept])
    assert np.allclose(np.asarray(y_train[1])[kept], np.asarray(x[1])[kept])

    # Drop fraction is in a sane neighbourhood of p (loose statistical check).
    frac = float(dropped0.mean())
    assert 0.05 < frac < 0.55, frac

    # Eval mode: deterministic x * (1 - p).
    y_eval = jax.block_until_ready(
        pallas_dropout(x, dropout=dropout, training=False))
    assert np.allclose(np.asarray(y_eval), np.asarray(x) * (1.0 - dropout),
                       atol=1e-6)

    print("KERNEL_OK")
</pallas_src>

<mosaic_0001>
module attributes {stable_mosaic.version = 11 : i64} {
  func.func @_dropout_train_kernel(%arg0: i32, %arg1: i32, %arg2: i32, %arg3: memref<1x256xi32, #tpu.memory_space<vmem>>, %arg4: memref<1x1x256xf32, #tpu.memory_space<vmem>>, %arg5: memref<1x1x256xf32, #tpu.memory_space<vmem>>) attributes {dimension_semantics = [#tpu.dimension_semantics<parallel>, #tpu.dimension_semantics<parallel>, #tpu.dimension_semantics<parallel>], iteration_bounds = array<i64: 1, 1, 2>, scalar_prefetch = 0 : i64, scratch_operands = 0 : i64, tpu.core_type = #tpu.core_type<tc>, window_params = [{transform_indices = @transform_0, window_bounds = array<i64: 1, 256>}, {transform_indices = @transform_1, window_bounds = array<i64: 1, 1, 256>}, {transform_indices = @transform_2, window_bounds = array<i64: 1, 1, 256>}]} {
    %c0 = arith.constant 0 : index
    %c0_0 = arith.constant 0 : index
    %0 = vector.load %arg3[%c0, %c0_0] : memref<1x256xi32, #tpu.memory_space<vmem>>, vector<1x256xi32>
    %c1073741824_i32 = arith.constant 1073741824 : i32
    %1 = vector.broadcast %c1073741824_i32 : i32 to vector<1x256xi32>
    %2 = arith.cmpi uge, %0, %1 : vector<1x256xi32>
    %3 = vector.shape_cast %2 : vector<1x256xi1> to vector<1x1x256xi1>
    %c0_1 = arith.constant 0 : index
    %c0_2 = arith.constant 0 : index
    %c0_3 = arith.constant 0 : index
    %4 = vector.load %arg4[%c0_1, %c0_2, %c0_3] : memref<1x1x256xf32, #tpu.memory_space<vmem>>, vector<1x1x256xf32>
    %cst = arith.constant 0.000000e+00 : f32
    %5 = vector.broadcast %cst : f32 to vector<1x1x256xf32>
    %6 = arith.select %3, %4, %5 : vector<1x1x256xi1>, vector<1x1x256xf32>
    %c0_4 = arith.constant 0 : index
    %c0_5 = arith.constant 0 : index
    %c0_6 = arith.constant 0 : index
    %7 = vector.load %arg5[%c0_4, %c0_5, %c0_6] : memref<1x1x256xf32, #tpu.memory_space<vmem>>, vector<1x1x256xf32>
    tpu.vector_store %arg5[%c0_4, %c0_5, %c0_6], %6 {strides = array<i32>} : memref<1x1x256xf32, #tpu.memory_space<vmem>>, vector<1x1x256xf32>,
    return
  }
  func.func @transform_0(%arg0: i32, %arg1: i32, %arg2: i32) -> (i32, i32) {
    %c0_i32 = arith.constant 0 : i32
    return %arg0, %arg1 : i32, i32
  }
  func.func @transform_1(%arg0: i32, %arg1: i32, %arg2: i32) -> (i32, i32, i32) {
    %c0_i32 = arith.constant 0 : i32
    return %arg2, %arg0, %arg1 : i32, i32, i32
  }
  func.func @transform_2(%arg0: i32, %arg1: i32, %arg2: i32) -> (i32, i32, i32) {
    %c0_i32 = arith.constant 0 : i32
    return %arg2, %arg0, %arg1 : i32, i32, i32
  }
}

</mosaic_0001>

<bundles_post_ra>
// kernel: tpu_custom_call.1
= control target key start
LH: loop header
LB: loop body
LE: loop exit
PB: predicated region body
PF: predicated region fallthrough
CT: control target
= control target key end

     0   :  { %7 = vsyncpa [#allocation3], 0  ;;  %s827_s0 = inlined_call_operand.hbm [shape: u32[1,256], index: 0, kind: input, shape index: {}]   ;;  %s828_s1 = inlined_call_operand.hbm [shape: f32[2,1,256], index: 1, kind: input, shape index: {}]   ;;  %s829_s2 = inlined_call_operand.hbm [shape: f32[2,1,256], index: 2, kind: output, shape index: {}]  }
   0x1   :  { %8 = vsyncpa [#allocation6], 0 }
   0x2   :  { %10 = vsyncpa [#allocation6 + $0x1], 0 }
   0x3   :  { %11 = vsyncpa [#allocation4], 0 }
   0x4   :  { %13 = vsyncpa [#allocation4 + $0x1], 0  ;;  %s611_s9 = smov 0   ;;  %s613_s10 = smov 0  }
   0x5   :  { %s615_s11 = smov 0   ;;  %s617_s12 = smov 0  }
   0x6   :  { %s619_s13 = smov 0   ;;  %s621_s14 = smov 0  }
   0x7 LB: > { %s355_s15 = sadd.s32 4294967295, %s591_s14   ;;  %s356_s16 = sadd.s32 4294967294, %s591_s14   ;;  %s591_s14 = sphi %s621_s14, %s19_s14   ;;  %s587_s13 = sphi %s619_s13, %s854_s13   ;;  %s583_s12 = sphi %s617_s12, %s853_s12   ;;  %s579_s11 = sphi %s615_s11, %s852_s11   ;;  %s575_s10 = sphi %s613_s10, %s851_s10   ;;  %s571_s9 = sphi %s611_s9, %s850_s9  }
   0x8   : > { %p90_p0 = scmp.ne.s32.totalorder %s575_s10, %s571_s9  ;;  %p645_p1 = scmp.eq.s32.totalorder %s355_s15, 0 }
   0x9   : > { %p649_p2 = scmp.eq.s32.totalorder %s355_s15, 1  ;;  %p124_p3 = scmp.eq.s32.totalorder %s356_s16, 1 }
   0xa   : > { %s834_s17 = scalar_select %p645_p1, 1, 0 }
   0xb   : > { %s835_s18 = scalar_select %p649_p2, 1, 0 }
   0xc   : > { %p655_p4 = por %p645_p1, %p90_p0  ;;  %p357_p5 = scmp.ge.s32.totalorder %s591_s14, 1 }
   0xd   : > { %p660_p6 = por %p124_p3, %p90_p0  ;;  %p131_p7 = scmp.lt.s32.totalorder %s591_s14, 3 }
   0xe   : > { %s836_s19 = scalar_select %p655_p4, 1, 0 }
   0xf   : > { %s837_s20 = scalar_select %p660_p6, 1, 0 }
  0x10   : > { %p665_p8 = pnand %p357_p5, %p131_p7  ;;  %s593_s22 = smov [#allocation2]  }
  0x11   : > { %s149_s23 = sshll.u32 %s593_s22, 4  ;;  %s31_s25 = sadd.s32 1, %s587_s13  ;;  %s150_s23 = int_to_ptr.vmem [resolvable:$true] %s149_s23 }
  0x12   : > { %s838_s21 = scalar_select %p665_p8, 1, 0 }
  0x13   : > { %p382_p10 = pneg %p665_p8  ;;  %s77_s26 = sadd.s32 1, %s579_s11 }
  0x14   : > { %p680_p12 = scmp.ge.s32.totalorder %s31_s25, 2  ;;  %s447_s30 = scalar_lea.hbm %s827_s0, 32 }
  0x15   : > { %p674_p11 = pnand %p382_p10, %p645_p1  ;;  %p448_p13 = scmp.ne.s32.totalorder %s827_s0, %s447_s30 }
  0x16   : > { %s840_s27 = scalar_select %p680_p12, 1, 0 }
  0x17   : > { %p449_p0 = pneg %p674_p11  ;;  %p454_p7 = scmp.lt.u32.totalorder %s447_s30, %s827_s0 }
  0x19   : > { %p450_p3 = pnand %p449_p0, %p448_p13 }
  0x1b   : > { %p451_p5 = pneg %p450_p3 }
  0x1d   : > { %p456_p10 = pnand %p454_p7, %p451_p5 }
  0x1f   : > { %459 = shalt.err (!%p456_p10)
}
  0x20   : > { %s460_s7 = scalar_lea.vmem %s150_s23, 32  ;;  %p468_p1 = scmp.lt.s32.totalorder %s150_s23, %s150_s23 }
  0x21   : > { %p461_p9 = scmp.ne.s32.totalorder %s150_s23, %s460_s7  ;;  %p469_p8 = scmp.lt.s32.totalorder %s460_s7, %s460_s7 }
  0x23   : > { %p463_p6 = pnand %p461_p9, %p449_p0  ;;  %p470_p2 = por %p469_p8, %p468_p1 }
  0x25   : > { %p464_p4 = pneg %p463_p6 }
  0x27   : > { %p471_p12 = pnand %p470_p2, %p464_p4 }
  0x29   : > { %474 = shalt.err (!%p471_p12)
}
  0x2a   : > { %385 = dma.hbm_to_vmem [thread:$0]  (!%p674_p11), %s827_s0, 32, %s150_s23, [#allocation3]  }
  0x2b   : > { %p841_p1 = scmp.ne.s32.totalorder %s840_s27, 0  ;;  %p84_p2 = scmp.ne.s32.totalorder %s579_s11, %s575_s10 }
  0x2c   : > { %p85_p4 = scmp.eq.s32.totalorder %s591_s14, 0  ;;  %p395_p6 = scmp.lt.s32.totalorder %s591_s14, 2 }
  0x2d   : > { %s856_s25 = smov (%p841_p1, %s31_s25), 0  ;;  %p842_p12 = scmp.ne.s32.totalorder %s835_s18, 0 }
  0x2e   : > { %s70_s16 = ssub.s32 %s587_s13, %s856_s25  ;;  %p86_p9 = por %p85_p4, %p84_p2 }
  0x2f   : > { %p75_p8 = scmp.eq.s32.totalorder %s70_s16, 0  ;;  %p712_p13 = por %p842_p12, %p84_p2 }
  0x30   : > { %s160_s24 = sand.u32 1, %s579_s11   ;;  %s372_s27 = sshll.u32 %s587_s13, 5 }
  0x31   : > { %s720_s28 = scalar_select %p75_p8, %s579_s11, %s77_s26  }
  0x32   : > { %s360_s23 = sshll.u32 %s160_s24, 1  ;;  %s726_s3 = scalar_lea.hbm %s828_s1, %s372_s27 }
  0x33   : > { %s164_s18 = scalar_lea.vmem [#allocation5], %s360_s23  ;;  %p730_p11 = pnand %p395_p6, %p86_p9 }
  0x34   : > { %s176_s4 = sshll.u32 %s164_s18, 4  ;;  %s161_s26 = scalar_lea.sflag [#allocation6], %s160_s24  ;;  %s728_s4 = int_to_ptr.vmem [resolvable:$true] %s176_s4 }
  0x35   : > { %s475_s6 = scalar_lea.hbm %s726_s3, 32  ;;  %p477_p3 = pneg %p730_p11 }
  0x36   : > { %p476_p0 = scmp.ne.s32.totalorder %s726_s3, %s475_s6  ;;  %s480_s15 = scalar_lea.hbm %s828_s1, 64 }
  0x37   : > { %p481_p10 = scmp.lt.u32.totalorder %s726_s3, %s828_s1  ;;  %p482_p1 = scmp.lt.u32.totalorder %s480_s15, %s475_s6 }
  0x38   : > { %p478_p5 = pnand %p477_p3, %p476_p0  ;;  %p484_p4 = scmp.lt.u32.totalorder %s475_s6, %s726_s3 }
  0x39   : > { %p483_p2 = por %p482_p1, %p481_p10 }
  0x3a   : > { %p479_p7 = pneg %p478_p5 }
  0x3b   : > { %p485_p6 = por %p484_p4, %p483_p2 }
  0x3d   : > { %p486_p8 = pnand %p485_p6, %p479_p7 }
  0x3f   : > { %489 = shalt.err (!%p486_p8)
}
  0x40   : > { %s490_s24 = scalar_lea.vmem %s728_s4, 32  ;;  %s594_s27 = smov [#allocation5]  }
  0x41   : > { %p491_p9 = scmp.ne.s32.totalorder %s728_s4, %s490_s24  ;;  %s495_s29 = sshll.u32 %s594_s27, 4  ;;  %s496_s29 = int_to_ptr.vmem [resolvable:$false] %s495_s29 }
  0x42   : > { %s497_s30 = scalar_lea.vmem %s496_s29, 64  ;;  %p498_p5 = scmp.lt.s32.totalorder %s728_s4, %s496_s29 }
  0x43   : > { %p493_p12 = pnand %p491_p9, %p477_p3  ;;  %p499_p10 = scmp.lt.s32.totalorder %s497_s30, %s490_s24 }
  0x45   : > { %p494_p0 = pneg %p493_p12  ;;  %p500_p1 = por %p499_p10, %p498_p5 }
  0x47   : > { %p501_p2 = pnand %p500_p1, %p494_p0 }
  0x49   : > { %504 = shalt.err (!%p501_p2)
}
  0x4a   : > { %389 = dma.hbm_to_vmem [thread:$0]  (!%p730_p11), %s726_s3, 32, %s728_s4, %s161_s26  }
  0x4b   : > { %p845_p7 = scmp.ne.s32.totalorder %s838_s21, 0 }
  0x4c   : > { %p846_p3 = scmp.ne.s32.totalorder (!%p845_p7), %s834_s17, 0 }
  0x4d   : > { %185 = sbr.rel (%p845_p7) target bundleno = 114 (0x72), region = 28 }
  0x54   : > { %558 = dma.done.wait (%p846_p3), [#allocation3], 32  }
  0x55   : > { %560 = vsyncadd (%p846_p3), [#allocation3], 4294967264  ;;  %s766_s18 = sand.u32 1, %s575_s10   ;;  %p847_p4 = scmp.ne.s32.totalorder %s836_s19, 0 }
  0x56   : > { %s365_s6 = sshll.u32 %s766_s18, 1  ;;  %s192_s5 = scalar_lea.sflag [#allocation6], %s766_s18 }
  0x57   : > { %s195_s7 = scalar_lea.vmem [#allocation5], %s365_s6 }
  0x58   : > { %562 = dma.done.wait (%p847_p4), %s192_s5, 32  }
  0x59   : > { %564 = vsyncadd (%p847_p4), %s192_s5, 4294967264  ;;  %v223_v0 = vlaneseq  ;;  %s215_s17 = scalar_lea.vmem [#allocation7], %s365_s6  ;;  %s373_s3 = sshll.u32 %s583_s12, 5  ;;  %v219_v1 = vld [vmem:[#allocation2] sm:$0x3] }
  0x5a   : > { %s247_s21 = sshll.u32 %s215_s17, 4  ;;  %v221_v2 = vld [vmem:[%s195_s7] sm:$0x3]  ;;  %vm220_vm1 = vcmp.ge.u32.totalorder %v219_v1, 1073741824  ;;  %s780_s19 = scalar_lea.hbm %s829_s2, %s373_s3  ;;  %s775_s21 = int_to_ptr.vmem [resolvable:$true] %s247_s21 }
  0x5b   : > { %vm225_vm0 = vcmp.lt.s32.totalorder %v223_v0, 256  ;;  %v222_v3 = vsel %vm220_vm1, %v221_v2, 0.0  ;;  %s229_s8 = scalar_lea.sflag [#allocation4], %s766_s18  ;;  %s505_s15 = scalar_lea.vmem %s775_s21, 32 }
  0x5c   : > { %227 = vst.msk [vmem:[%s215_s17] sm:$0x3] %vm225_vm0, %v222_v3  ;;  %p506_p11 = scmp.ne.s32.totalorder %s775_s21, %s505_s15  ;;  %s595_s12 = smov [#allocation7]  }
  0x5d   : > { %s509_s16 = sshll.u32 %s595_s12, 4  ;;  %s510_s16 = int_to_ptr.vmem [resolvable:$false] %s509_s16 }
  0x5e   : > { %p507_p6 = pnand %p506_p11, %p712_p13  ;;  %s511_s23 = scalar_lea.vmem %s510_s16, 64 }
  0x5f   : > { %p512_p9 = scmp.lt.s32.totalorder %s775_s21, %s510_s16  ;;  %p513_p12 = scmp.lt.s32.totalorder %s511_s23, %s505_s15 }
  0x60   : > { %p508_p8 = pneg %p507_p6 }
  0x61   : > { %p514_p0 = por %p513_p12, %p512_p9 }
  0x63   : > { %p515_p5 = pnand %p514_p0, %p508_p8 }
  0x65   : > { %518 = shalt.err (!%p515_p5)
}
  0x66   : > { %s519_s24 = scalar_lea.hbm %s780_s19, 32  ;;  %s523_s30 = scalar_lea.hbm %s829_s2, 64 }
  0x67   : > { %p520_p10 = scmp.ne.s32.totalorder %s780_s19, %s519_s24  ;;  %p524_p7 = scmp.lt.u32.totalorder %s780_s19, %s829_s2 }
  0x68   : > { %p525_p3 = scmp.lt.u32.totalorder %s523_s30, %s519_s24  ;;  %p527_p11 = scmp.lt.u32.totalorder %s519_s24, %s780_s19 }
  0x69   : > { %p521_p1 = pnand %p520_p10, %p712_p13 }
  0x6a   : > { %p526_p4 = por %p525_p3, %p524_p7 }
  0x6b   : > { %p522_p2 = pneg %p521_p1 }
  0x6c   : > { %p528_p6 = por %p527_p11, %p526_p4 }
  0x6e   : > { %p529_p8 = pnand %p528_p6, %p522_p2 }
  0x70   : > { %532 = shalt.err (!%p529_p8)
}
  0x71   : > { %380 = dma.vmem_to_hbm [thread:$0]  (%p712_p13), %s775_s21, 32, %s780_s19, %s229_s8  }
  0x72 PF: > { %s259_s5 = sand.u32 1, %s571_s9   ;;  %p848_p9 = scmp.ne.s32.totalorder %s837_s20, 0 }
  0x73   : > { %p849_p12 = scmp.ge.s32.totalorder %s591_s14, 2  ;;  %s260_s7 = scalar_lea.sflag [#allocation4], %s259_s5 }
  0x75   : > { %p391_p0 = pnand %p849_p12, %p848_p9 }
  0x77   : > { %566 = dma.done.wait (!%p391_p0), %s260_s7, 32  }
  0x78   : > { %568 = vsyncadd (!%p391_p0), %s260_s7, 4294967264  ;;  %s19_s14 = sadd.s32 1, %s591_s14   ;;  %s850_s9 = smov %s575_s10 }
  0x79   : > { %p16_p5 = scmp.ge.s32.totalorder %s19_s14, 4   ;;  %s851_s10 = smov %s579_s11 }
  0x7a   : > { %s852_s11 = smov %s720_s28  ;;  %s853_s12 = smov %s587_s13 }
  0x7b   : > { %s854_s13 = smov %s856_s25  ;;  %18 = sbr.rel (!%p16_p5) target bundleno = 7 (0x7), region = 79 }
  0x82   :  { %265 = vsyncpa [#allocation3], 1 }
  0x83   :  { %267 = vsyncpa [#allocation3 + $0x1], 1 }
  0x84   :  { %268 = vsyncpa [#allocation6], 1 }
  0x85   :  { %270 = vsyncpa [#allocation6 + $0x1], 1 }
  0x86   :  { %271 = vsyncpa [#allocation4], 1 }
  0x87   :  { %273 = vsyncpa [#allocation4 + $0x1], 1 }

</bundles_post_ra>
